<compile_context>
chip_gen: v7x
topology: tpu7x:2x2x1
jax: 0.10.0
libtpu: 0.0.40
codegen_flags: <defaults>
</compile_context>

<pallas_src>
import functools

import jax
import jax.numpy as jnp
from jax import lax
from jax.experimental import pallas as pl
from jax.experimental.pallas import tpu as pltpu


def _round_up(v: int, m: int) -> int:
    return ((v + m - 1) // m) * m


def _make_head_kernel(*, p_dropout: float, training: bool,
                      tb: int, tk: int, k_total: int):
    """Build the kernel body (dropout config / tile sizes baked in at trace)."""
    apply_dropout = training and p_dropout > 0.0
    drop_threshold = int(round(p_dropout * (1 << 24)))      # 24-bit threshold
    inv_keep = 1.0 / (1.0 - p_dropout) if apply_dropout else 1.0

    def kernel(seed_ref, x_ref, w_ref, b_ref, o_ref, acc_ref):
        k = pl.program_id(2)

        @pl.when(k == 0)
        def _init():
            acc_ref[...] = jnp.zeros_like(acc_ref)

        xv = x_ref[...]                                      # keep input dtype

        if apply_dropout:
            # Global element index of every entry of this x tile.
            row = (lax.broadcasted_iota(jnp.int32, (tb, tk), 0)
                   + pl.program_id(0) * tb)
            col = lax.broadcasted_iota(jnp.int32, (tb, tk), 1) + k * tk
            idx = row * jnp.int32(k_total) + col
            # splitmix32-style avalanche hash (int32, wraparound mults,
            # logical right shifts) -> uniform bits per element.
            h = (idx ^ seed_ref[0]) * jnp.int32(-1640531527)   # 0x9E3779B9
            h = h ^ lax.shift_right_logical(h, 16)
            h = h * jnp.int32(-2048144789)                     # 0x85EBCA6B
            h = h ^ lax.shift_right_logical(h, 13)
            h = h * jnp.int32(-1028477387)                     # 0xC2B2AE35
            h = h ^ lax.shift_right_logical(h, 16)
            h24 = h & jnp.int32(0x00FFFFFF)                    # uniform [0, 2^24)
            keep = h24 >= jnp.int32(drop_threshold)            # P(keep) = 1 - p
            xv = jnp.where(keep, xv, jnp.zeros_like(xv))

        # x:[tb,tk] . w:[tn,tk] contracted on the last dims -> [tb,tn]
        acc_ref[...] += lax.dot_general(
            xv, w_ref[...],
            dimension_numbers=(((1,), (1,)), ((), ())),
            preferred_element_type=jnp.float32)

        @pl.when(k == pl.num_programs(2) - 1)
        def _finalize():
            out = acc_ref[...]
            if apply_dropout:
                # Fold the 1/(1-p) rescale into the (much smaller) logits.
                out = out * jnp.float32(inv_keep)
            out = out + b_ref[...].astype(jnp.float32)
            o_ref[...] = out.astype(o_ref.dtype)

    return kernel


@functools.partial(jax.jit, static_argnames=("p_dropout", "training"))
def classification_head(x, weight, bias, seed, *, p_dropout=0.1, training=False):
    """Pallas equivalent of ClassificationHead.forward.

    x:      [B, input_size]
    weight: [num_classes, input_size]   (same layout as nn.Linear.weight)
    bias:   [num_classes]
    seed:   int32 scalar (used only when training=True and p_dropout > 0)
    """
    B, K = x.shape
    N, K2 = weight.shape
    assert K == K2 and bias.shape == (N,)

    # Tile sizes: 8-multiple on the sublane (batch) axis, lane-dense
    # 128-multiples on N/K.  Small enough to stay well under the scoped VMEM
    # default on every generation (v7x has half the VMEM of v5e/v6e).
    tb = min(_round_up(B, 8), 256)
    tn = min(_round_up(N, 128), 256)
    tk = min(_round_up(K, 128), 512)

    Bp, Np, Kp = _round_up(B, tb), _round_up(N, tn), _round_up(K, tk)

    # Zero padding: padded K columns contribute 0 to the accumulation,
    # padded N rows / B rows are sliced off below.
    xp = jnp.pad(x, ((0, Bp - B), (0, Kp - K)))
    wp = jnp.pad(weight, ((0, Np - N), (0, Kp - K)))
    bp = jnp.pad(bias, (0, Np - N)).reshape(1, Np)
    seed_arr = jnp.asarray(seed, dtype=jnp.int32).reshape((1,))

    grid = (pl.cdiv(Bp, tb), pl.cdiv(Np, tn), pl.cdiv(Kp, tk))

    kernel = _make_head_kernel(
        p_dropout=float(p_dropout), training=bool(training),
        tb=tb, tk=tk, k_total=Kp)

    grid_spec = pltpu.PrefetchScalarGridSpec(
        num_scalar_prefetch=1,                              # seed lands in SMEM
        grid=grid,
        in_specs=[
            pl.BlockSpec((tb, tk), lambda i, j, k, s: (i, k)),   # x tile
            pl.BlockSpec((tn, tk), lambda i, j, k, s: (j, k)),   # weight tile
            pl.BlockSpec((1, tn), lambda i, j, k, s: (0, j)),    # bias tile
        ],
        out_specs=pl.BlockSpec((tb, tn), lambda i, j, k, s: (i, j)),
        scratch_shapes=[pltpu.VMEM((tb, tn), jnp.float32)],      # f32 accumulator
    )

    itemsize = jnp.dtype(x.dtype).itemsize
    cost = pl.CostEstimate(
        flops=2 * B * K * N,
        transcendentals=0,
        bytes_accessed=(x.size * itemsize
                        + weight.size * jnp.dtype(weight.dtype).itemsize
                        + bias.size * jnp.dtype(bias.dtype).itemsize
                        + B * N * itemsize))

    out_padded = pl.pallas_call(
        kernel,
        out_shape=jax.ShapeDtypeStruct((Bp, Np), x.dtype),
        grid_spec=grid_spec,
        compiler_params=pltpu.CompilerParams(
            dimension_semantics=("parallel", "parallel", "arbitrary")),
        cost_estimate=cost,
    )(seed_arr, xp, wp, bp)

    return out_padded[:B, :N]


if __name__ == "__main__":
    # Small shapes implied by the module: x is [batch, input_size].
    batch, input_size, num_classes = 8, 32, 8
    p_dropout = 0.1

    key = jax.random.PRNGKey(0)
    kx, kw, kb = jax.random.split(key, 3)

    x = jax.random.normal(kx, (batch, input_size), dtype=jnp.float32)
    # Deterministic init mimicking nn.Linear's uniform(-1/sqrt(in), 1/sqrt(in)).
    bound = 1.0 / (input_size ** 0.5)
    weight = jax.random.uniform(kw, (num_classes, input_size),
                                minval=-bound, maxval=bound, dtype=jnp.float32)
    bias = jax.random.uniform(kb, (num_classes,),
                              minval=-bound, maxval=bound, dtype=jnp.float32)
    seed = jnp.int32(1234)

    ref = x @ weight.T + bias

    # Eval mode (dropout = identity): check against plain-JAX reference.
    logits_eval = classification_head(x, weight, bias, seed,
                                      p_dropout=p_dropout, training=False)
    jax.block_until_ready(logits_eval)
    assert logits_eval.shape == (batch, num_classes)
    assert jnp.allclose(logits_eval, ref, atol=1e-5, rtol=1e-5)

    # Training with p=0: dropout is identity -> must match the reference too.
    logits_p0 = classification_head(x, weight, bias, seed,
                                    p_dropout=0.0, training=True)
    jax.block_until_ready(logits_p0)
    assert jnp.allclose(logits_p0, ref, atol=1e-5, rtol=1e-5)

    # Training with dropout (in-kernel hash-based mask): shape/finite sanity.
    logits_train = classification_head(x, weight, bias, seed,
                                       p_dropout=p_dropout, training=True)
    jax.block_until_ready(logits_train)
    assert logits_train.shape == (batch, num_classes)
    assert bool(jnp.all(jnp.isfinite(logits_train)))

    print("KERNEL_OK")
</pallas_src>

<mosaic_0001>
module attributes {stable_mosaic.version = 11 : i64} {
  func.func @kernel(%arg0: i32, %arg1: i32, %arg2: i32, %arg3: memref<1xi32, #tpu.memory_space<smem>>, %arg4: memref<8x128xf32, #tpu.memory_space<vmem>>, %arg5: memref<128x128xf32, #tpu.memory_space<vmem>>, %arg6: memref<1x128xf32, #tpu.memory_space<vmem>>, %arg7: memref<8x128xf32, #tpu.memory_space<vmem>>, %arg8: memref<8x128xf32, #tpu.memory_space<vmem>>) attributes {dimension_semantics = [#tpu.dimension_semantics<parallel>, #tpu.dimension_semantics<parallel>, #tpu.dimension_semantics<arbitrary>], iteration_bounds = array<i64: 1, 1, 1>, scalar_prefetch = 1 : i64, scratch_operands = 1 : i64, tpu.core_type = #tpu.core_type<tc>, window_params = [{transform_indices = @transform_0, window_bounds = array<i64: 8, 128>}, {transform_indices = @transform_1, window_bounds = array<i64: 128, 128>}, {transform_indices = @transform_2, window_bounds = array<i64: 1, 128>}, {transform_indices = @transform_3, window_bounds = array<i64: 8, 128>}]} {
    %c0_i32 = arith.constant 0 : i32
    %0 = arith.cmpi eq, %arg2, %c0_i32 : i32
    %1 = arith.extui %0 : i1 to i32
    %c0_i32_0 = arith.constant 0 : i32
    %2 = arith.cmpi ne, %1, %c0_i32_0 : i32
    scf.if %2 {
      %cst_10 = arith.constant 0.000000e+00 : f32
      %12 = vector.broadcast %cst_10 : f32 to vector<8x128xf32>
      %c0_11 = arith.constant 0 : index
      %c0_12 = arith.constant 0 : index
      %13 = vector.load %arg8[%c0_11, %c0_12] : memref<8x128xf32, #tpu.memory_space<vmem>>, vector<8x128xf32>
      tpu.vector_store %arg8[%c0_11, %c0_12], %12 {strides = array<i32>} : memref<8x128xf32, #tpu.memory_space<vmem>>, vector<8x128xf32>,
    } else {
    }
    %c0 = arith.constant 0 : index
    %c0_1 = arith.constant 0 : index
    %3 = vector.load %arg4[%c0, %c0_1] : memref<8x128xf32, #tpu.memory_space<vmem>>, vector<8x128xf32>
    %c0_2 = arith.constant 0 : index
    %c0_3 = arith.constant 0 : index
    %4 = vector.load %arg8[%c0_2, %c0_3] : memref<8x128xf32, #tpu.memory_space<vmem>>, vector<8x128xf32>
    %c0_4 = arith.constant 0 : index
    %c0_5 = arith.constant 0 : index
    %5 = vector.load %arg5[%c0_4, %c0_5] : memref<128x128xf32, #tpu.memory_space<vmem>>, vector<128x128xf32>
    %cst = arith.constant dense<0.000000e+00> : vector<8x128xf32>
    %6 = tpu.matmul %3, %5, %cst {dimension_numbers = #tpu.dot_dimension_numbers<[1], [1], [0], [0], [0, 0, 1, 0], [], []>} : vector<8x128xf32>, vector<128x128xf32>, vector<8x128xf32> -> vector<8x128xf32>
    %7 = arith.addf %4, %6 : vector<8x128xf32>
    %c0_6 = arith.constant 0 : index
    %c0_7 = arith.constant 0 : index
    %8 = vector.load %arg8[%c0_6, %c0_7] : memref<8x128xf32, #tpu.memory_space<vmem>>, vector<8x128xf32>
    tpu.vector_store %arg8[%c0_6, %c0_7], %7 {strides = array<i32>} : memref<8x128xf32, #tpu.memory_space<vmem>>, vector<8x128xf32>,
    %c0_i32_8 = arith.constant 0 : i32
    %9 = arith.cmpi eq, %arg2, %c0_i32_8 : i32
    %10 = arith.extui %9 : i1 to i32
    %c0_i32_9 = arith.constant 0 : i32
    %11 = arith.cmpi ne, %10, %c0_i32_9 : i32
    scf.if %11 {
      %c0_10 = arith.constant 0 : index
      %c0_11 = arith.constant 0 : index
      %12 = vector.load %arg8[%c0_10, %c0_11] : memref<8x128xf32, #tpu.memory_space<vmem>>, vector<8x128xf32>
      %c0_12 = arith.constant 0 : index
      %c0_13 = arith.constant 0 : index
      %13 = vector.load %arg6[%c0_12, %c0_13] : memref<1x128xf32, #tpu.memory_space<vmem>>, vector<1x128xf32>
      %14 = vector.broadcast %13 : vector<1x128xf32> to vector<8x128xf32>
      %15 = arith.addf %12, %14 : vector<8x128xf32>
      %c0_14 = arith.constant 0 : index
      %c0_15 = arith.constant 0 : index
      %16 = vector.load %arg7[%c0_14, %c0_15] : memref<8x128xf32, #tpu.memory_space<vmem>>, vector<8x128xf32>
      tpu.vector_store %arg7[%c0_14, %c0_15], %15 {strides = array<i32>} : memref<8x128xf32, #tpu.memory_space<vmem>>, vector<8x128xf32>,
    } else {
    }
    return
  }
  func.func @transform_0(%arg0: i32, %arg1: i32, %arg2: i32, %arg3: memref<1xi32, #tpu.memory_space<smem>>) -> (i32, i32) {
    %c0_i32 = arith.constant 0 : i32
    return %arg0, %arg2 : i32, i32
  }
  func.func @transform_1(%arg0: i32, %arg1: i32, %arg2: i32, %arg3: memref<1xi32, #tpu.memory_space<smem>>) -> (i32, i32) {
    %c0_i32 = arith.constant 0 : i32
    return %arg1, %arg2 : i32, i32
  }
  func.func @transform_2(%arg0: i32, %arg1: i32, %arg2: i32, %arg3: memref<1xi32, #tpu.memory_space<smem>>) -> (i32, i32) {
    %c0_i32 = arith.constant 0 : i32
    %c0_i32_0 = arith.constant 0 : i32
    return %c0_i32, %arg1 : i32, i32
  }
  func.func @transform_3(%arg0: i32, %arg1: i32, %arg2: i32, %arg3: memref<1xi32, #tpu.memory_space<smem>>) -> (i32, i32) {
    %c0_i32 = arith.constant 0 : i32
    return %arg0, %arg1 : i32, i32
  }
}

</mosaic_0001>

<bundles_post_ra>
// kernel: classification_head.1
= control target key start
LH: loop header
LB: loop body
LE: loop exit
PB: predicated region body
PF: predicated region fallthrough
CT: control target
= control target key end

     0   :  { %v244_v2 = vmov 0.0|0.0   ;;  %vm245_vm0 = vmmov 0   ;;  %v246_v4 = vmov 0.0   ;;  %s339_s0 = inlined_call_operand.<no memory space> [shape: s32[1], index: 0, kind: input, shape index: {}]   ;;  %s340_s1 = inlined_call_operand.vmem [shape: f32[8,128], index: 1, kind: input, shape index: {}]   ;;  %s341_s2 = inlined_call_operand.vmem [shape: f32[128,128], index: 2, kind: input, shape index: {}]   ;;  %s342_s3 = inlined_call_operand.vmem [shape: f32[1,128], index: 3, kind: input, shape index: {}]   ;;  %s343_s4 = inlined_call_operand.hbm [shape: f32[8,128], index: 4, kind: output, shape index: {}]  }
   0x1   :  { %v24_v0 = vld [vmem:[%s341_s2] sm:$0xff]  ;;  %v25_v1 = vld [vmem:[%s341_s2 + $0x8] sm:$0xff]  ;;  %192 = vmatprep.subr.bf16.mxu0 %v244_v2  ;;  %189 = vmatprep.mubr.msk.f32.mxu0 %vm245_vm0, %v246_v4  ;;  %v26_v5 = vld [vmem:[%s341_s2 + $0x10] sm:$0xff] }
   0x2   :  { %v193_v3 = vpack.c.bf16 %v25_v1, %v24_v0  ;;  %v27_v6 = vld [vmem:[%s341_s2 + $0x18] sm:$0xff] }
   0x4   :  { %194 = vmatpush3.bf16.xpose.msra.mxu0 %v193_v3 }
   0x5   :  { %195 = vmatprep.subr.bf16.mxu0 %v244_v2 }
   0x6   :  { %10 = vsyncpa [#allocation6], 0  ;;  %v196_v7 = vpack.c.bf16 %v27_v6, %v26_v5  ;;  %v28_v8 = vld [vmem:[%s341_s2 + $0x20] sm:$0xff]  ;;  %v29_v9 = vld [vmem:[%s341_s2 + $0x28] sm:$0xff]  ;;  %s247_s23 = smov [#allocation5]  }
   0x7   :  { %v199_v10 = vpack.c.bf16 %v29_v9, %v28_v8  ;;  %v30_v11 = vld [vmem:[%s341_s2 + $0x30] sm:$0xff]  ;;  %v31_v12 = vld [vmem:[%s341_s2 + $0x38] sm:$0xff]  ;;  %v32_v14 = vld [vmem:[%s341_s2 + $0x40] sm:$0xff]  ;;  %s131_s24 = sshll.u32 %s247_s23, 4  ;;  %s132_s24 = int_to_ptr.vmem [resolvable:$true] %s131_s24 }
   0x8   :  { %v202_v13 = vpack.c.bf16 %v31_v12, %v30_v11  ;;  %v33_v15 = vld [vmem:[%s341_s2 + $0x48] sm:$0xff]  ;;  %v34_v17 = vld [vmem:[%s341_s2 + $0x50] sm:$0xff]  ;;  %v35_v18 = vld [vmem:[%s341_s2 + $0x58] sm:$0xff]  ;;  %s220_s25 = scalar_lea.vmem %s132_s24, 128  ;;  %p225_p1 = scmp.lt.s32.totalorder %s132_s24, %s132_s24 }
   0x9   :  { %v205_v16 = vpack.c.bf16 %v33_v15, %v32_v14  ;;  %v208_v19 = vpack.c.bf16 %v35_v18, %v34_v17  ;;  %v36_v20 = vld [vmem:[%s341_s2 + $0x60] sm:$0xff]  ;;  %v37_v21 = vld [vmem:[%s341_s2 + $0x68] sm:$0xff]  ;;  %v38_v23 = vld [vmem:[%s341_s2 + $0x70] sm:$0xff]  ;;  %p221_p0 = scmp.ne.s32.totalorder %s132_s24, %s220_s25  ;;  %p226_p2 = scmp.lt.s32.totalorder %s220_s25, %s220_s25 }
   0xa   :  { %v211_v22 = vpack.c.bf16 %v37_v21, %v36_v20  ;;  %v39_v24 = vld [vmem:[%s341_s2 + $0x78] sm:$0xff]  ;;  %v22_v26 = vld [vmem:[%s340_s1] sm:$0xff] }
   0xb   :  { %v214_v25 = vpack.c.bf16 %v39_v24, %v38_v23  ;;  %v139_v27 = vld [vmem:[%s342_s3] ss:$0 sm:$0xff]  ;;  %p227_p3 = por %p226_p2, %p225_p1 }
   0xc   :  { %197 = vmatpush3.bf16.xpose.msra.mxu0 %v196_v7 }
   0xd   :  { %198 = vmatprep.subr.bf16.mxu0 %v244_v2  ;;  %p228_p4 = pnand %p227_p3, %p221_p0 }
  0x14   :  { %200 = vmatpush3.bf16.xpose.msra.mxu0 %v199_v10 }
  0x15   :  { %201 = vmatprep.subr.bf16.mxu0 %v244_v2 }
  0x1c   :  { %203 = vmatpush3.bf16.xpose.msra.mxu0 %v202_v13 }
  0x1d   :  { %204 = vmatprep.subr.bf16.mxu0 %v244_v2 }
  0x24   :  { %206 = vmatpush3.bf16.xpose.msra.mxu0 %v205_v16 }
  0x25   :  { %207 = vmatprep.subr.bf16.mxu0 %v244_v2 }
  0x2c   :  { %209 = vmatpush3.bf16.xpose.msra.mxu0 %v208_v19 }
  0x2d   :  { %210 = vmatprep.subr.bf16.mxu0 %v244_v2 }
  0x34   :  { %212 = vmatpush3.bf16.xpose.msra.mxu0 %v211_v22 }
  0x35   :  { %213 = vmatprep.subr.bf16.mxu0 %v244_v2 }
  0x3c   :  { %215 = vmatpush3.bf16.xpose.msra.mxu0 %v214_v25 }
  0x43   :  { %190 = vmatmul.mubr.f32.vlgmr.msra.gmra.mrb[0].mxu0 %v22_v26 }
 0x116   :  { %v106_v28 = vpop.f32.mrb[0].mxu0 }
 0x117   :  { %v123_v29 = vadd.f32 %v139_v27, %v106_v28  ;;  %v191_v30 = vpop.f32.mrb[1].mxu0 }
 0x119   :  { %124 = vst [vmem:[#allocation5] sm:$0xff] %v123_v29 }
 0x11a   :  { %231 = shalt.err (!%p228_p4)
}
 0x11b   :  { %s232_s26 = scalar_lea.hbm %s343_s4, 128 }
 0x11c   :  { %p233_p5 = scmp.ne.s32.totalorder %s343_s4, %s232_s26  ;;  %p236_p6 = scmp.lt.u32.totalorder %s232_s26, %s343_s4 }
 0x11e   :  { %p238_p7 = pnand %p236_p6, %p233_p5 }
 0x120   :  { %241 = shalt.err (!%p238_p7)
}
 0x121   :  { %134 = dma.vmem_to_hbm [thread:$0]  %s132_s24, 128, %s343_s4, [#allocation6]  }
 0x122   :  { %242 = dma.done.wait [#allocation6], 128  }
 0x123   :  { %243 = vsyncadd [#allocation6], 4294967168 }
 0x124   :  { %138 = vsyncpa [#allocation6], 1 }

</bundles_post_ra>
